<compile_context>
chip_gen: v6e
topology: v6e:2x2x1
jax: 0.10.0
libtpu: 0.0.40
codegen_flags: <defaults>
</compile_context>

<pallas_src>
import functools

import jax
import jax.numpy as jnp
from jax.experimental import pallas as pl
from jax.experimental.pallas import tpu as pltpu

BN_EPS = 1e-5


def sap_kernel(x_ref, w1t_ref, b1_ref, w2t_ref, b2_ref, out_ref, *, t_real):
    bt, Tp, Cp = x_ref.shape
    x = x_ref[...]                                    # (bt, Tp, Cp) bf16
    # Tp is a multiple of 16 (bf16 sublane tile) -> this merge is a layout no-op.
    x2d = x.reshape(bt * Tp, Cp)

    # Conv1d(C -> dim, k=1):  x @ W1^T + b1  (bf16 inputs, f32 accumulate)
    h = jnp.dot(x2d, w1t_ref[...], preferred_element_type=jnp.float32)  # (bt*Tp, dimp)
    h = jnp.maximum(h + b1_ref[...], 0.0)             # bias + ReLU in f32

    # Conv1d(dim -> C, k=1) with eval-mode BatchNorm folded into W2 / b2
    s = jnp.dot(h.astype(jnp.bfloat16), w2t_ref[...],
                preferred_element_type=jnp.float32)   # (bt*Tp, Cp)
    s = s + b2_ref[...]

    # Softmax over the (possibly padded) time axis, per batch element and channel.
    s3 = s.reshape(bt, Tp, Cp)                        # Tp % 8 == 0 -> free split
    if Tp != t_real:
        # Mask padded time steps so they get zero attention weight.
        t_idx = jax.lax.broadcasted_iota(jnp.int32, (1, Tp, 1), 1)
        s3 = jnp.where(t_idx < t_real, s3, -jnp.inf)

    m = jnp.max(s3, axis=1, keepdims=True)            # (bt, 1, Cp)
    e = jnp.exp(s3 - m)                               # (bt, Tp, Cp), 0 at padded t
    denom = jnp.sum(e, axis=1)                        # (bt, Cp)
    num = jnp.sum(e * x.astype(jnp.float32), axis=1)  # (bt, Cp)

    # Reciprocal applied AFTER the time reduction (factor-of-T less VPU work);
    # EUP reciprocal -> free bundle slot.
    out_ref[...] = num * pl.reciprocal(denom, approx=True)


def _round_up(n, m):
    return (n + m - 1) // m * m


def _vmem_budgets():
    """Generation-aware VMEM numbers: (tile_budget, vmem_limit, two_cores)."""
    try:
        cap = pltpu.get_tpu_info().vmem_capacity_bytes
    except Exception:
        cap = 64 << 20  # conservative (v7x-like) fallback
    if cap < (100 << 20):          # v7x: 64 MiB / TC, 2 TensorCores per chip
        return 32 << 20, 48 << 20, True
    return 64 << 20, 96 << 20, False   # v5e / v6e: 128 MiB, single TC


def _choose_b_tile(b_pad, t_pad, c_pad, dim_pad, vmem_budget):
    """Largest multiple-of-8 divisor of b_pad whose per-step working set fits the
    VMEM budget.  No artificial row / step-count caps: fewer, fatter grid steps
    amortize the ~0.35 us per-step pipeline overhead."""
    def step_bytes(bt):
        rows = bt * t_pad
        x_dbl = 2 * rows * c_pad * 2                  # double-buffered bf16 input tile
        o_dbl = 2 * bt * c_pad * 4                    # double-buffered f32 output tile
        interm = rows * (dim_pad + 3 * c_pad) * 4     # h, s, e, e*x partials (rough, f32)
        return x_dbl + o_dbl + interm

    best = 8
    for d in range(8, b_pad + 1, 8):
        if b_pad % d:
            continue
        if step_bytes(d) <= vmem_budget:
            best = max(best, d)
    return best


def sap_forward(X, params):
    """X: (b, c, h, w) NCHW float32.  Returns (b, c*h) float32."""
    b, c, h, w = X.shape
    C = c * h                      # out_size
    T = w                          # time axis
    dim = params["w1"].shape[0]

    Cp = _round_up(C, 128)         # lane-dense channel width
    dimp = _round_up(dim, 128)     # lane-dense hidden width
    Tp = _round_up(T, 16)          # bf16 sublane tile -> in-kernel reshapes are free
    Bp = _round_up(b, 8)           # output block (bt, Cp) needs bt % 8 == 0

    # --- host-side param prep -------------------------------------------------
    # Fold eval-mode BatchNorm (per-channel affine after ReLU) into conv2.
    inv_std = jax.lax.rsqrt(params["bn_var"] + BN_EPS)          # (dim,)
    scale = params["bn_gamma"] * inv_std                        # (dim,)
    shift = params["bn_beta"] - params["bn_mean"] * scale       # (dim,)
    w2t = jnp.transpose(params["w2"])                           # (dim, C)
    w2t_eff = scale[:, None] * w2t                              # (dim, C)
    b2_eff = params["b2"] + shift @ w2t                         # (C,)

    w1t = jnp.transpose(params["w1"])                           # (C, dim)
    b1 = params["b1"]

    # Zero-pad channel / hidden axes (zero rows & columns contribute nothing).
    if Cp != C or dimp != dim:
        w1t = jnp.pad(w1t, ((0, Cp - C), (0, dimp - dim)))
        w2t_eff = jnp.pad(w2t_eff, ((0, dimp - dim), (0, Cp - C)))
        b2_eff = jnp.pad(b2_eff, (0, Cp - C))
        b1 = jnp.pad(b1, (0, dimp - dim))
    w1t = w1t.astype(jnp.bfloat16)
    w2t_eff = w2t_eff.astype(jnp.bfloat16)
    b1 = b1.reshape(1, dimp).astype(jnp.float32)
    b2_eff = b2_eff.reshape(1, Cp).astype(jnp.float32)

    # Glue: NCHW -> (b, C, T) -> channels-last (b, T, C) in bf16; pad b/T/C.
    x_bct = X.reshape(b, C, T).astype(jnp.bfloat16)
    x_btc = jnp.transpose(x_bct, (0, 2, 1))
    if (Bp, Tp, Cp) != (b, T, C):
        x_btc = jnp.pad(x_btc, ((0, Bp - b), (0, Tp - T), (0, Cp - C)))

    # --- tile choice ------------------------------------------------------------
    tile_budget, vmem_limit, two_cores = _vmem_budgets()
    bt = _choose_b_tile(Bp, Tp, Cp, dimp, tile_budget)
    if two_cores and bt == Bp and Bp >= 16 and (Bp // 2) % 8 == 0:
        # Whole batch fits in VMEM: split into two steps so both v7x TensorCores
        # get work (megacore sharding via dimension_semantics=("parallel",)).
        bt = Bp // 2
    grid = (Bp // bt,)

    const2d = lambda shape: pl.BlockSpec(shape, lambda i: (0, 0))
    # NOTE: constant operands total ~100-200 KB, so default double buffering of
    # them costs negligible VMEM.

    out_pad = pl.pallas_call(
        functools.partial(sap_kernel, t_real=T),
        out_shape=jax.ShapeDtypeStruct((Bp, Cp), jnp.float32),
        grid_spec=pltpu.PrefetchScalarGridSpec(
            num_scalar_prefetch=0,
            grid=grid,
            in_specs=[
                pl.BlockSpec((bt, Tp, Cp), lambda i: (i, 0, 0)),  # x
                const2d((Cp, dimp)),                              # w1^T
                const2d((1, dimp)),                               # b1
                const2d((dimp, Cp)),                              # w2^T (BN folded)
                const2d((1, Cp)),                                 # b2 (BN folded)
            ],
            out_specs=pl.BlockSpec((bt, Cp), lambda i: (i, 0)),
        ),
        compiler_params=pltpu.CompilerParams(
            dimension_semantics=("parallel",),
            vmem_limit_bytes=vmem_limit,
        ),
    )(x_btc, w1t, b1, w2t_eff, b2_eff)

    return out_pad[:b, :C]


def init_params(key, out_size, dim=128):
    k1, k2, k3, k4, k5, k6 = jax.random.split(key, 6)
    scale1 = 1.0 / jnp.sqrt(out_size)
    scale2 = 1.0 / jnp.sqrt(dim)
    return {
        "w1": jax.random.uniform(k1, (dim, out_size), jnp.float32, -scale1, scale1),
        "b1": jax.random.uniform(k2, (dim,), jnp.float32, -scale1, scale1),
        "w2": jax.random.uniform(k3, (out_size, dim), jnp.float32, -scale2, scale2),
        "b2": jax.random.uniform(k4, (out_size,), jnp.float32, -scale2, scale2),
        "bn_gamma": jax.random.uniform(k5, (dim,), jnp.float32, 0.5, 1.5),
        "bn_beta": jax.random.uniform(k6, (dim,), jnp.float32, -0.5, 0.5),
        "bn_mean": jnp.zeros((dim,), jnp.float32),
        "bn_var": jnp.ones((dim,), jnp.float32),
    }


def sap_reference(X, params):
    """Pure-JAX f32 reference of the PyTorch forward (eval-mode BN)."""
    b, c, h, w = X.shape
    x = X.reshape(b, c * h, w).astype(jnp.float32)                     # (b, C, T)
    hdn = jnp.einsum("dc,bct->bdt", params["w1"], x) + params["b1"][None, :, None]
    hdn = jnp.maximum(hdn, 0.0)
    hdn = (hdn - params["bn_mean"][None, :, None]) * jax.lax.rsqrt(
        params["bn_var"][None, :, None] + BN_EPS
    ) * params["bn_gamma"][None, :, None] + params["bn_beta"][None, :, None]
    s = jnp.einsum("cd,bdt->bct", params["w2"], hdn) + params["b2"][None, :, None]
    attn = jax.nn.softmax(s, axis=2)
    return jnp.sum(attn * x, axis=2)


if __name__ == "__main__":
    key = jax.random.PRNGKey(0)
    kx, kp = jax.random.split(key)

    b, c, h, w = 16, 4, 16, 16      # out_size = c*h = 64, time T = w = 16
    out_size, dim = c * h, 128

    X = jax.random.normal(kx, (b, c, h, w), jnp.float32)
    params = init_params(kp, out_size, dim)

    out = sap_forward(X, params)
    jax.block_until_ready(out)

    ref = sap_reference(X, params)
    assert out.shape == (b, out_size)
    # bf16 inputs/weights + approx reciprocal perturb attention weights slightly;
    # f32 accumulation keeps the error well inside this tolerance.
    assert jnp.allclose(out, ref, atol=2e-2, rtol=2e-2), "mismatch vs reference"

    print("KERNEL_OK")
</pallas_src>

<mosaic_0001>
module attributes {stable_mosaic.version = 11 : i64} {
  func.func @sap_kernel(%arg0: i32, %arg1: memref<8x16x128xbf16, #tpu.memory_space<vmem>>, %arg2: memref<128x128xbf16, #tpu.memory_space<vmem>>, %arg3: memref<1x128xf32, #tpu.memory_space<vmem>>, %arg4: memref<128x128xbf16, #tpu.memory_space<vmem>>, %arg5: memref<1x128xf32, #tpu.memory_space<vmem>>, %arg6: memref<8x128xf32, #tpu.memory_space<vmem>>) attributes {dimension_semantics = [#tpu.dimension_semantics<parallel>], iteration_bounds = array<i64: 2>, scalar_prefetch = 0 : i64, scratch_operands = 0 : i64, tpu.core_type = #tpu.core_type<tc>, window_params = [{transform_indices = @transform_0, window_bounds = array<i64: 8, 16, 128>}, {pipeline_mode = #tpu.pipeline_mode<synchronous>, transform_indices = @transform_1, window_bounds = array<i64: 128, 128>}, {pipeline_mode = #tpu.pipeline_mode<synchronous>, transform_indices = @transform_2, window_bounds = array<i64: 1, 128>}, {pipeline_mode = #tpu.pipeline_mode<synchronous>, transform_indices = @transform_3, window_bounds = array<i64: 128, 128>}, {pipeline_mode = #tpu.pipeline_mode<synchronous>, transform_indices = @transform_4, window_bounds = array<i64: 1, 128>}, {transform_indices = @transform_5, window_bounds = array<i64: 8, 128>}]} {
    %c0 = arith.constant 0 : index
    %c0_0 = arith.constant 0 : index
    %c0_1 = arith.constant 0 : index
    %0 = vector.load %arg1[%c0, %c0_0, %c0_1] : memref<8x16x128xbf16, #tpu.memory_space<vmem>>, vector<8x16x128xbf16>
    %1 = vector.shape_cast %0 : vector<8x16x128xbf16> to vector<128x128xbf16>
    %c0_2 = arith.constant 0 : index
    %c0_3 = arith.constant 0 : index
    %2 = vector.load %arg2[%c0_2, %c0_3] : memref<128x128xbf16, #tpu.memory_space<vmem>>, vector<128x128xbf16>
    %cst = arith.constant dense<0.000000e+00> : vector<128x128xf32>
    %3 = tpu.matmul %1, %2, %cst {dimension_numbers = #tpu.dot_dimension_numbers<[1], [0], [0], [1], [0, 0, 1, 1], [], []>} : vector<128x128xbf16>, vector<128x128xbf16>, vector<128x128xf32> -> vector<128x128xf32>
    %c0_4 = arith.constant 0 : index
    %c0_5 = arith.constant 0 : index
    %4 = vector.load %arg3[%c0_4, %c0_5] : memref<1x128xf32, #tpu.memory_space<vmem>>, vector<1x128xf32>
    %5 = vector.broadcast %4 : vector<1x128xf32> to vector<128x128xf32>
    %6 = arith.addf %3, %5 : vector<128x128xf32>
    %cst_6 = arith.constant 0.000000e+00 : f32
    %7 = vector.broadcast %cst_6 : f32 to vector<128x128xf32>
    %8 = arith.maximumf %6, %7 : vector<128x128xf32>
    %9 = arith.truncf %8 : vector<128x128xf32> to vector<128x128xbf16>
    %c0_7 = arith.constant 0 : index
    %c0_8 = arith.constant 0 : index
    %10 = vector.load %arg4[%c0_7, %c0_8] : memref<128x128xbf16, #tpu.memory_space<vmem>>, vector<128x128xbf16>
    %cst_9 = arith.constant dense<0.000000e+00> : vector<128x128xf32>
    %11 = tpu.matmul %9, %10, %cst_9 {dimension_numbers = #tpu.dot_dimension_numbers<[1], [0], [0], [1], [0, 0, 1, 1], [], []>} : vector<128x128xbf16>, vector<128x128xbf16>, vector<128x128xf32> -> vector<128x128xf32>
    %c0_10 = arith.constant 0 : index
    %c0_11 = arith.constant 0 : index
    %12 = vector.load %arg5[%c0_10, %c0_11] : memref<1x128xf32, #tpu.memory_space<vmem>>, vector<1x128xf32>
    %13 = vector.broadcast %12 : vector<1x128xf32> to vector<128x128xf32>
    %14 = arith.addf %11, %13 : vector<128x128xf32>
    %15 = vector.shape_cast %14 : vector<128x128xf32> to vector<8x16x128xf32>
    %cst_12 = arith.constant dense<0xFF800000> : vector<8x128xf32>
    %16 = vector.multi_reduction <maximumf>, %15, %cst_12 [1] : vector<8x16x128xf32> to vector<8x128xf32>
    %17 = vector.shape_cast %16 : vector<8x128xf32> to vector<8x1x128xf32>
    %18 = vector.broadcast %17 : vector<8x1x128xf32> to vector<8x16x128xf32>
    %19 = arith.subf %15, %18 : vector<8x16x128xf32>
    %20 = math.exp %19 : vector<8x16x128xf32>
    %cst_13 = arith.constant dense<0.000000e+00> : vector<8x128xf32>
    %21 = vector.multi_reduction <add>, %20, %cst_13 [1] : vector<8x16x128xf32> to vector<8x128xf32>
    %22 = arith.extf %0 : vector<8x16x128xbf16> to vector<8x16x128xf32>
    %23 = arith.mulf %20, %22 : vector<8x16x128xf32>
    %cst_14 = arith.constant dense<0.000000e+00> : vector<8x128xf32>
    %24 = vector.multi_reduction <add>, %23, %cst_14 [1] : vector<8x16x128xf32> to vector<8x128xf32>
    %25 = tpu.reciprocal %21 {approx = true} : vector<8x128xf32> -> vector<8x128xf32>
    %26 = arith.mulf %24, %25 : vector<8x128xf32>
    %c0_15 = arith.constant 0 : index
    %c0_16 = arith.constant 0 : index
    %27 = vector.load %arg6[%c0_15, %c0_16] : memref<8x128xf32, #tpu.memory_space<vmem>>, vector<8x128xf32>
    tpu.vector_store %arg6[%c0_15, %c0_16], %26 {strides = array<i32>} : memref<8x128xf32, #tpu.memory_space<vmem>>, vector<8x128xf32>,
    return
  }
  func.func @transform_0(%arg0: i32) -> (i32, i32, i32) {
    %c0_i32 = arith.constant 0 : i32
    %c0_i32_0 = arith.constant 0 : i32
    %c0_i32_1 = arith.constant 0 : i32
    return %arg0, %c0_i32, %c0_i32_0 : i32, i32, i32
  }
  func.func @transform_1(%arg0: i32) -> (i32, i32) {
    %c0_i32 = arith.constant 0 : i32
    %c0_i32_0 = arith.constant 0 : i32
    %c0_i32_1 = arith.constant 0 : i32
    return %c0_i32, %c0_i32_0 : i32, i32
  }
  func.func @transform_2(%arg0: i32) -> (i32, i32) {
    %c0_i32 = arith.constant 0 : i32
    %c0_i32_0 = arith.constant 0 : i32
    %c0_i32_1 = arith.constant 0 : i32
    return %c0_i32, %c0_i32_0 : i32, i32
  }
  func.func @transform_3(%arg0: i32) -> (i32, i32) {
    %c0_i32 = arith.constant 0 : i32
    %c0_i32_0 = arith.constant 0 : i32
    %c0_i32_1 = arith.constant 0 : i32
    return %c0_i32, %c0_i32_0 : i32, i32
  }
  func.func @transform_4(%arg0: i32) -> (i32, i32) {
    %c0_i32 = arith.constant 0 : i32
    %c0_i32_0 = arith.constant 0 : i32
    %c0_i32_1 = arith.constant 0 : i32
    return %c0_i32, %c0_i32_0 : i32, i32
  }
  func.func @transform_5(%arg0: i32) -> (i32, i32) {
    %c0_i32 = arith.constant 0 : i32
    %c0_i32_0 = arith.constant 0 : i32
    return %arg0, %c0_i32 : i32, i32
  }
}

</mosaic_0001>

<bundles_post_ra>
// kernel: tpu_custom_call.1
= control target key start
LH: loop header
LB: loop body
LE: loop exit
PB: predicated region body
PF: predicated region fallthrough
CT: control target
= control target key end

     0   :  { %10 = vsyncpa [#allocation3], 0  ;;  %s1882_s0 = inlined_call_operand.hbm [shape: bf16[16,16,128], index: 0, kind: input, shape index: {}]   ;;  %s1883_s1 = inlined_call_operand.hbm [shape: bf16[128,128], index: 1, kind: input, shape index: {}]   ;;  %s1884_s2 = inlined_call_operand.vmem [shape: f32[1,128], index: 2, kind: input, shape index: {}]   ;;  %s1885_s3 = inlined_call_operand.hbm [shape: bf16[128,128], index: 3, kind: input, shape index: {}]   ;;  %s1886_s4 = inlined_call_operand.vmem [shape: f32[1,128], index: 4, kind: input, shape index: {}]   ;;  %s1887_s5 = inlined_call_operand.hbm [shape: f32[16,128], index: 5, kind: output, shape index: {}]  }
   0x1   :  { %12 = vsyncpa [#allocation3 + $0x1], 0 }
   0x2   :  { %13 = vsyncpa [#allocation6], 0 }
   0x3   :  { %14 = vsyncpa [#allocation4], 0 }
   0x4   :  { %16 = vsyncpa [#allocation4 + $0x1], 0  ;;  %s1567_s18 = smov 0   ;;  %s1569_s19 = smov 0  }
   0x5   :  { %s1571_s20 = smov 0   ;;  %s1573_s21 = smov 0  }
   0x6 LB: > { %s1588_s22 = sadd.s32 4294967295, %s1529_s21   ;;  %s1090_s23 = sadd.s32 4294967294, %s1529_s21   ;;  %s1529_s21 = sphi %s1573_s21, %s1910_s21   ;;  %s1525_s20 = sphi %s1571_s20, %s1909_s20   ;;  %s1521_s19 = sphi %s1569_s19, %s1908_s19   ;;  %s1517_s18 = sphi %s1567_s18, %s1907_s18  }
   0x7   : > { %p42_p0 = scmp.ne.s32.totalorder %s1521_s19, %s1517_s18  ;;  %p1888_p1 = scmp.eq.s32.totalorder %s1588_s22, 0 }
   0x8   : > { %p150_p2 = scmp.eq.s32.totalorder %s1588_s22, 1  ;;  %p156_p3 = scmp.eq.s32.totalorder %s1090_s23, 1 }
   0x9   : > { %p1597_p4 = por %p1888_p1, %p42_p0  ;;  %p1091_p5 = scmp.ge.s32.totalorder %s1529_s21, 1 }
   0xa   : > { %p1602_p6 = por %p156_p3, %p42_p0  ;;  %p163_p7 = scmp.lt.s32.totalorder %s1529_s21, 3 }
   0xb   : > { %s1893_s24 = scalar_select %p1597_p4, 1, 0 }
   0xc   : > { %s1894_s25 = scalar_select %p1602_p6, 1, 0 }
   0xd   : > { %p1607_p8 = pnand %p1091_p5, %p163_p7  ;;  %s1531_s27 = smov [#allocation5]  }
   0xe   : > { %s175_s28 = sshll.u32 %s1531_s27, 4  ;;  %s1532_s30 = smov [#allocation7]   ;;  %s176_s28 = int_to_ptr.vmem [resolvable:$true] %s175_s28 }
   0xf   : > { %s1895_s26 = scalar_select %p1607_p8, 1, 0 }
  0x10   : > { %p1244_p9 = pneg %p1607_p8  ;;  %s191_s6 = sshll.u32 %s1532_s30, 4  ;;  %s192_s6 = int_to_ptr.vmem [resolvable:$true] %s191_s6 }
  0x11   : > { %s1392_s7 = scalar_lea.vmem %s176_s28, 1024  ;;  %p1400_p5 = scmp.lt.s32.totalorder %s176_s28, %s176_s28 }
  0x12   : > { %p1616_p11 = pnand %p1244_p9, %p1888_p1  ;;  %p1393_p13 = scmp.ne.s32.totalorder %s176_s28, %s1392_s7 }
  0x13   : > { %p1401_p7 = scmp.lt.s32.totalorder %s1392_s7, %s1392_s7 }
  0x14   : > { %p1383_p12 = pneg %p1616_p11 }
  0x15   : > { %p1402_p10 = por %p1401_p7, %p1400_p5 }
  0x16   : > { %p1395_p0 = pnand %p1393_p13, %p1383_p12 }
  0x18   : > { %p1396_p3 = pneg %p1395_p0 }
  0x1a   : > { %p1403_p9 = pnand %p1402_p10, %p1396_p3 }
  0x1c   : > { %1406 = shalt.err (!%p1403_p9)
}
  0x1d   : > { %s1889_s8 = smov 64   ;;  %s1534_s9 = smov 4  }
  0x1e   : > { %1247 = dma.hbm_to_vmem [thread:$0]  (!%p1616_p11), %s1883_s1, 1024, %s176_s28, [#allocation6], %s1889_s8, %s1889_s8, %s1534_s9  }
  0x1f   : > { %s1418_s12 = scalar_lea.vmem %s192_s6, 1024  ;;  %p1426_p10 = scmp.lt.s32.totalorder %s192_s6, %s192_s6 }
  0x20   : > { %p1419_p13 = scmp.ne.s32.totalorder %s192_s6, %s1418_s12  ;;  %p1427_p3 = scmp.lt.s32.totalorder %s1418_s12, %s1418_s12 }
  0x22   : > { %p1421_p0 = pnand %p1419_p13, %p1383_p12  ;;  %p1428_p7 = por %p1427_p3, %p1426_p10 }
  0x24   : > { %p1422_p5 = pneg %p1421_p0 }
  0x26   : > { %p1429_p9 = pnand %p1428_p7, %p1422_p5 }
  0x28   : > { %1432 = shalt.err (!%p1429_p9)
}
  0x29   : > { %1250 = dma.hbm_to_vmem [thread:$0]  (!%p1616_p11), %s1885_s3, 1024, %s192_s6, [#allocation6], %s1889_s8, %s1889_s8, %s1534_s9  }
  0x2a   : > { %s1645_s15 = sadd.s32 1, %s1529_s21   ;;  %s29_s16 = sadd.s32 1, %s1525_s20 }
  0x2b   : > { %s26_s17 = ssub.s32 %s1529_s21, %s1645_s15  ;;  %p36_p12 = scmp.ne.s32.totalorder %s1525_s20, %s1521_s19 }
  0x2c   : > { %p27_p13 = scmp.eq.s32.totalorder %s26_s17, 0  ;;  %p37_p0 = scmp.eq.s32.totalorder %s1529_s21, 0 }
  0x2d   : > { %p1655_p5 = por %p150_p2, %p36_p12  ;;  %p1261_p10 = scmp.lt.s32.totalorder %s1529_s21, 2 }
  0x2e   : > { %s1661_s27 = scalar_select %p27_p13, %s1525_s20, %s29_s16  }
  0x2f   : > { %s1897_s23 = scalar_select %p1655_p5, 1, 0 }
  0x30   : > { %p38_p3 = por %p37_p0, %p36_p12  ;;  %s208_s28 = sand.u32 1, %s1525_s20  }
  0x31   : > { %s1095_s29 = sshll.u32 %s208_s28, 6  ;;  %s1135_s30 = sshll.u32 %s1529_s21, 10 }
  0x32   : > { %s1668_s10 = scalar_lea.hbm %s1882_s0, %s1135_s30  ;;  %s212_s11 = scalar_lea.vmem [#allocation2], %s1095_s29 }
  0x33   : > { %s220_s12 = sshll.u32 %s212_s11, 4  ;;  %p1672_p2 = pnand %p1261_p10, %p38_p3  ;;  %s1670_s12 = int_to_ptr.vmem [resolvable:$true] %s220_s12 }
  0x34   : > { %s1676_s14 = scalar_lea.sflag [#allocation3], %s208_s28  ;;  %s1433_s16 = scalar_lea.hbm %s1668_s10, 1024 }
  0x35   : > { %p1434_p11 = scmp.ne.s32.totalorder %s1668_s10, %s1433_s16  ;;  %p1435_p7 = pneg %p1672_p2 }
  0x36   : > { %s1438_s29 = scalar_lea.hbm %s1882_s0, 2048  ;;  %p1439_p13 = scmp.lt.s32.totalorder %s1668_s10, %s1882_s0 }
  0x37   : > { %p1436_p9 = pnand %p1435_p7, %p1434_p11  ;;  %p1440_p0 = scmp.lt.s32.totalorder %s1438_s29, %s1433_s16 }
  0x39   : > { %p1437_p12 = pneg %p1436_p9  ;;  %p1441_p10 = por %p1440_p0, %p1439_p13 }
  0x3b   : > { %p1442_p3 = pnand %p1441_p10, %p1437_p12 }
  0x3d   : > { %1445 = shalt.err (!%p1442_p3)
}
  0x3e   : > { %s1446_s28 = scalar_lea.vmem %s1670_s12, 1024  ;;  %s1535_s11 = smov [#allocation2]  }
  0x3f   : > { %p1447_p1 = scmp.ne.s32.totalorder %s1670_s12, %s1446_s28  ;;  %s1451_s8 = sshll.u32 %s1535_s11, 4  ;;  %s1452_s8 = int_to_ptr.vmem [resolvable:$false] %s1451_s8 }
  0x40   : > { %s1453_s17 = scalar_lea.vmem %s1452_s8, 2048  ;;  %p1454_p9 = scmp.lt.s32.totalorder %s1670_s12, %s1452_s8 }
  0x41   : > { %p1449_p6 = pnand %p1447_p1, %p1435_p7  ;;  %p1455_p5 = scmp.lt.s32.totalorder %s1453_s17, %s1446_s28 }
  0x43   : > { %p1450_p11 = pneg %p1449_p6  ;;  %p1456_p4 = por %p1455_p5, %p1454_p9 }
  0x45   : > { %p1457_p8 = pnand %p1456_p4, %p1450_p11 }
  0x47   : > { %1460 = shalt.err (!%p1457_p8)
}
  0x48   : > { %s1899_s16 = smov 64   ;;  %p1900_p1 = scmp.ne.s32.totalorder %s1895_s26, 0 }
  0x49   : > { %1254 = dma.hbm_to_vmem [thread:$0]  (!%p1672_p2), %s1668_s10, 1024, %s1670_s12, %s1676_s14, %s1899_s16, %s1899_s16, %s1534_s9  }
  0x4a   : > { %232 = sbr.rel (%p1900_p1) target bundleno = 639 (0x27f), region = 40  ;;  %s1703_s30 = sand.u32 (!%p1900_p1), 1, %s1521_s19  }
  0x4b   : > { %s1100_s8 = sshll.u32 (!%p1900_p1), %s1703_s30, 6  ;;  %s235_s29 = scalar_lea.sflag (!%p1900_p1), [#allocation3], %s1703_s30 }
  0x4c   : > { %s1707_s6 = scalar_lea.vmem (!%p1900_p1), [#allocation2], %s1100_s8  ;;  %p1901_p4 = scmp.ne.s32.totalorder (!%p1900_p1), %s1893_s24, 0 }
  0x4f   : > { %1504 = dma.done.wait (%p1901_p4), %s235_s29, 1024  }
  0x50   : > { %1506 = vsyncadd (%p1901_p4), %s235_s29, 4294966272  ;;  %p1902_p6 = scmp.eq.s32.totalorder %s1588_s22, 0 }
  0x52   : > { %1508 = dma.done.wait (%p1902_p6), [#allocation6], 2048   ;;  %p1903_p8 = pmov %p1902_p6 }
  0x53   : > { %v1301_v0 = vld [vmem:[#allocation5 + $0x38] sm:$0xff]   ;;  %v1302_v1 = vld [vmem:[#allocation5 + $0x30] sm:$0xff]   ;;  %v1303_v2 = vld [vmem:[#allocation5 + $0x28] sm:$0xff]   ;;  %vm971_vm0 = vcmask 1041409   ;;  %vm973_vm1 = vcmask 1042434   ;;  %vm975_vm2 = vcmask 1043459  }
  0x54   : > { %1510 = vsyncadd (%p1903_p8), [#allocation6], 4294965248  ;;  %1168 = vmatprep.subr.bf16.mxu0 %v1301_v0  ;;  %v1304_v3 = vld [vmem:[#allocation5 + $0x20] sm:$0xff]   ;;  %v1305_v5 = vld [vmem:[#allocation5 + $0x18] sm:$0xff]   ;;  %vm977_vm3 = vcmask 1044484   ;;  %vm979_vm4 = vcmask 1045509  }
  0x55   : > { %1169 = vmatpush3.bf16.msra.mxu0 %v1301_v0  ;;  %v1718_v4 = vld [vmem:[%s1707_s6] sm:$0xff]   ;;  %v1317_v6 = vld [vmem:[#allocation7 + $0x38] sm:$0xff]   ;;  %v1318_v7 = vld [vmem:[#allocation7 + $0x30] sm:$0xff]   ;;  %s1103_s12 = sshll.u32 %s1703_s30, 3  ;;  %vm981_vm5 = vcmask 1046534   ;;  %s1131_s13 = sshll.u32 %s1588_s22, 7 }
  0x56   : > { %1170 = vmatprep.subr.bf16.mxu0 %v1302_v1  ;;  %1184 = vmatprep.mubr.bf16.mxu0 %v1718_v4  ;;  %v1306_v8 = vld [vmem:[#allocation5 + $0x10] sm:$0xff]   ;;  %v1319_v9 = vld [vmem:[#allocation7 + $0x28] sm:$0xff]   ;;  %v1320_v10 = vld [vmem:[#allocation7 + $0x20] sm:$0xff]   ;;  %s272_s14 = scalar_lea.vmem [#allocation8], %s1103_s12  ;;  %vm983_vm6 = vcmask 1047559   ;;  %s1845_s17 = scalar_lea.hbm %s1887_s5, %s1131_s13 }
  0x57   : > { %1200 = vmatprep.subr.bf16.mxu1 %v1317_v6  ;;  %v1307_v11 = vld [vmem:[#allocation5 + $0x8] sm:$0xff]   ;;  %v1321_v12 = vld [vmem:[#allocation7 + $0x18] sm:$0xff]   ;;  %v1308_v13 = vld [vmem:[#allocation5] sm:$0xff]   ;;  %s1001_s7 = sshll.u32 %s272_s14, 4  ;;  %s988_s16 = scalar_lea.sflag [#allocation4], %s1703_s30  ;;  %s1002_s7 = int_to_ptr.vmem [resolvable:$true] %s1001_s7 }
  0x58   : > { %1201 = vmatpush3.bf16.msra.mxu1 %v1317_v6  ;;  %v1722_v14 = vld [vmem:[%s1707_s6 + $0x8] sm:$0xff]   ;;  %v1725_v15 = vld [vmem:[%s1707_s6 + $0x10] sm:$0xff]   ;;  %v1730_v16 = vld [vmem:[%s1707_s6 + $0x18] sm:$0xff]   ;;  %s1461_s8 = scalar_lea.vmem %s1002_s7, 128  ;;  %p1904_p2 = scmp.ne.s32.totalorder %s1897_s23, 0 }
  0x59   : > { %1171 = vmatpush3.bf16.msra.mxu0 %v1302_v1  ;;  %1202 = vmatprep.subr.bf16.mxu1 %v1318_v7  ;;  %v1733_v17 = vld [vmem:[%s1707_s6 + $0x20] sm:$0xff]   ;;  %v1738_v18 = vld [vmem:[%s1707_s6 + $0x28] sm:$0xff]   ;;  %v1741_v19 = vld [vmem:[%s1707_s6 + $0x30] sm:$0xff]   ;;  %p1462_p5 = scmp.ne.s32.totalorder %s1002_s7, %s1461_s8  ;;  %s1536_s22 = smov [#allocation8]  }
  0x5a   : > { %1172 = vmatprep.subr.bf16.mxu0 %v1303_v2  ;;  %v1746_v20 = vld [vmem:[%s1707_s6 + $0x38] sm:$0xff]   ;;  %v1322_v21 = vld [vmem:[#allocation7 + $0x10] sm:$0xff]   ;;  %v1323_v22 = vld [vmem:[#allocation7 + $0x8] sm:$0xff]   ;;  %s1465_s29 = sshll.u32 %s1536_s22, 4  ;;  %s1466_s29 = int_to_ptr.vmem [resolvable:$false] %s1465_s29 }
  0x5b   : > { %v1324_v23 = vld [vmem:[#allocation7] sm:$0xff]   ;;  %p1463_p7 = pnand %p1462_p5, %p1904_p2  ;;  %s1467_s6 = scalar_lea.vmem %s1466_s29, 256 }
  0x5c   : > { %1203 = vmatpush3.bf16.msra.mxu1 %v1318_v7  ;;  %v1104_v26 = vld [vmem:[%s1884_s2] ss:$0 sm:$0xff]  ;;  %p1468_p13 = scmp.lt.s32.totalorder %s1002_s7, %s1466_s29  ;;  %p1469_p0 = scmp.lt.s32.totalorder %s1467_s6, %s1461_s8 }
  0x5d   : > { %1173 = vmatpush3.bf16.msra.mxu0 %v1303_v2  ;;  %1204 = vmatprep.subr.bf16.mxu1 %v1319_v9  ;;  %p1464_p12 = pneg %p1463_p7 }
  0x5e   : > { %1174 = vmatprep.subr.bf16.mxu0 %v1304_v3  ;;  %p1470_p10 = por %p1469_p0, %p1468_p13 }
  0x60   : > { %1205 = vmatpush3.bf16.msra.mxu1 %v1319_v9  ;;  %p1471_p3 = pnand %p1470_p10, %p1464_p12 }
  0x61   : > { %1175 = vmatpush3.bf16.msra.mxu0 %v1304_v3  ;;  %1206 = vmatprep.subr.bf16.mxu1 %v1320_v10 }
  0x62   : > { %1176 = vmatprep.subr.bf16.mxu0 %v1305_v5 }
  0x64   : > { %1207 = vmatpush3.bf16.msra.mxu1 %v1320_v10 }
  0x65   : > { %1177 = vmatpush3.bf16.msra.mxu0 %v1305_v5  ;;  %1208 = vmatprep.subr.bf16.mxu1 %v1321_v12 }
  0x66   : > { %1178 = vmatprep.subr.bf16.mxu0 %v1306_v8 }
  0x68   : > { %1209 = vmatpush3.bf16.msra.mxu1 %v1321_v12 }
  0x69   : > { %1179 = vmatpush3.bf16.msra.mxu0 %v1306_v8  ;;  %1210 = vmatprep.subr.bf16.mxu1 %v1322_v21 }
  0x6a   : > { %1180 = vmatprep.subr.bf16.mxu0 %v1307_v11 }
  0x6c   : > { %1211 = vmatpush3.bf16.msra.mxu1 %v1322_v21 }
  0x6d   : > { %1181 = vmatpush3.bf16.msra.mxu0 %v1307_v11  ;;  %1212 = vmatprep.subr.bf16.mxu1 %v1323_v22 }
  0x6e   : > { %1182 = vmatprep.subr.bf16.mxu0 %v1308_v13 }
  0x70   : > { %1213 = vmatpush3.bf16.msra.mxu1 %v1323_v22 }
  0x71   : > { %1183 = vmatpush3.bf16.msra.mxu0 %v1308_v13  ;;  %1214 = vmatprep.subr.bf16.mxu1 %v1324_v23 }
  0x74   : > { %1185 = vmatmul.mubr.bf16.vlgmr.msra.gmra.mxu0 %v1722_v14  ;;  %1215 = vmatpush3.bf16.msra.mxu1 %v1324_v23 }
  0x75   : > { %1188 = vmatprep.mubr.bf16.mxu0 %v1725_v15 }
  0x7c   : > { %1189 = vmatmul.mubr.bf16.gmra.mxu0 %v1730_v16 }
  0x7d   : > { %1192 = vmatprep.mubr.bf16.mxu0 %v1733_v17 }
  0x84   : > { %1193 = vmatmul.mubr.bf16.gmra.mxu0 %v1738_v18 }
  0x85   : > { %1196 = vmatprep.mubr.bf16.mxu0 %v1741_v19 }
  0x8c   : > { %1197 = vmatmul.mubr.bf16.gmra.mxu0 %v1746_v20 }
 0x134   : > { %v1186_v24 = vpop.f32.mrf.mxu0 }
 0x135   : > { %v453_v30 = vadd.f32 %v1186_v24, %v1104_v26 }
 0x136   : > { %v444_v25 = vpop.f32.mrf.mxu0 }
 0x137   : > { %v445_v28 = vadd.f32 %v1104_v26, %v444_v25  ;;  %v509_v37 = vmax.f32 %v453_v30, 0.0 }
 0x138   : > { %v1187_v27 = vpop.f32.mrf.mxu0 }
 0x139   : > { %v456_v29 = vadd.f32 %v1187_v27, %v1104_v26  ;;  %v507_v35 = vmax.f32 %v445_v28, 0.0  ;;  %v1755_v27 = vld [vmem:[%s1886_s4] ss:$0 sm:$0xff] }
 0x13a   : > { %v447_v31 = vpop.f32.mrf.mxu0 }
 0x13b   : > { %v448_v32 = vadd.f32 %v1104_v26, %v447_v31  ;;  %v510_v33 = vmax.f32 %v456_v29, 0.0 }
 0x13c   : > { %v1190_v34 = vpop.f32.mrf.mxu0 }
 0x13d   : > { %v508_v36 = vmax.f32 %v448_v32, 0.0  ;;  %v524_v40 = vpack.c.bf16 %v510_v33, %v509_v37  ;;  %v469_v44 = vadd.f32 %v1190_v34, %v1104_v26 }
 0x13e   : > { %v460_v38 = vpop.f32.mrf.mxu0 }
 0x13f   : > { %v523_v39 = vpack.c.bf16 %v508_v36, %v507_v35  ;;  %v461_v42 = vadd.f32 %v1104_v26, %v460_v38  ;;  %v513_v51 = vmax.f32 %v469_v44, 0.0 }
 0x140   : > { %v1191_v41 = vpop.f32.mrf.mxu0 }
 0x141   : > { %v472_v43 = vadd.f32 %v1191_v41, %v1104_v26  ;;  %1216 = vmatprep.mubr.bf16.mxu1 %v523_v39  ;;  %v511_v49 = vmax.f32 %v461_v42, 0.0 }
 0x142   : > { %v463_v45 = vpop.f32.mrf.mxu0  ;;  %1217 = vmatmul.mubr.bf16.vlgmr.msra.gmra.mxu1 %v524_v40 }
 0x143   : > { %v464_v46 = vadd.f32 %v1104_v26, %v463_v45  ;;  %v514_v47 = vmax.f32 %v472_v43, 0.0 }
 0x144   : > { %v1194_v48 = vpop.f32.mrf.mxu0 }
 0x145   : > { %v512_v50 = vmax.f32 %v464_v46, 0.0  ;;  %v526_v54 = vpack.c.bf16 %v514_v47, %v513_v51  ;;  %v485_v58 = vadd.f32 %v1194_v48, %v1104_v26 }
 0x146   : > { %v476_v52 = vpop.f32.mrf.mxu0 }
 0x147   : > { %v525_v53 = vpack.c.bf16 %v512_v50, %v511_v49  ;;  %v477_v56 = vadd.f32 %v1104_v26, %v476_v52  ;;  %v517_v1 = vmax.f32 %v485_v58, 0.0 }
 0x148   : > { %v1195_v55 = vpop.f32.mrf.mxu0 }
 0x149   : > { %v488_v57 = vadd.f32 %v1195_v55, %v1104_v26  ;;  %1220 = vmatprep.mubr.bf16.mxu1 %v525_v53  ;;  %v515_v63 = vmax.f32 %v477_v56, 0.0 }
 0x14a   : > { %v479_v59 = vpop.f32.mrf.mxu0  ;;  %1221 = vmatmul.mubr.bf16.gmra.mxu1 %v526_v54 }
 0x14b   : > { %v480_v60 = vadd.f32 %v1104_v26, %v479_v59  ;;  %v518_v61 = vmax.f32 %v488_v57, 0.0 }
 0x14c   : > { %v1198_v62 = vpop.f32.mrf.mxu0 }
 0x14d   : > { %v516_v0 = vmax.f32 %v480_v60, 0.0  ;;  %v528_v5 = vpack.c.bf16 %v518_v61, %v517_v1  ;;  %v501_v9 = vadd.f32 %v1198_v62, %v1104_v26 }
 0x14e   : > { %v492_v2 = vpop.f32.mrf.mxu0 }
 0x14f   : > { %v527_v3 = vpack.c.bf16 %v516_v0, %v515_v63  ;;  %v493_v7 = vadd.f32 %v1104_v26, %v492_v2  ;;  %v521_v22 = vmax.f32 %v501_v9, 0.0 }
 0x150   : > { %v1199_v6 = vpop.f32.mrf.mxu0 }
 0x151   : > { %v504_v8 = vadd.f32 %v1199_v6, %v1104_v26  ;;  %1224 = vmatprep.mubr.bf16.mxu1 %v527_v3  ;;  %v519_v13 = vmax.f32 %v493_v7, 0.0 }
 0x152   : > { %v495_v10 = vpop.f32.mrf.mxu0  ;;  %1225 = vmatmul.mubr.bf16.gmra.mxu1 %v528_v5 }
 0x153   : > { %v496_v11 = vadd.f32 %v1104_v26, %v495_v10  ;;  %v522_v12 = vmax.f32 %v504_v8, 0.0 }
 0x155   : > { %v520_v21 = vmax.f32 %v496_v11, 0.0  ;;  %v530_v24 = vpack.c.bf16 %v522_v12, %v521_v22 }
 0x157   : > { %v529_v23 = vpack.c.bf16 %v520_v21, %v519_v13 }
 0x159   : > { %1228 = vmatprep.mubr.bf16.mxu1 %v529_v23 }
 0x15a   : > { %1229 = vmatmul.mubr.bf16.gmra.mxu1 %v530_v24 }
 0x202   : > { %v1218_v25 = vpop.f32.mrf.mxu1 }
 0x203   : > { %v645_v30 = vadd.f32 %v1218_v25, %v1755_v27 }
 0x204   : > { %v636_v28 = vpop.f32.mrf.mxu1 }
 0x205   : > { %v637_v32 = vadd.f32 %v1755_v27, %v636_v28 }
 0x206   : > { %v1219_v29 = vpop.f32.mrf.mxu1 }
 0x207   : > { %v648_v26 = vadd.f32 %v1219_v29, %v1755_v27 }
 0x208   : > { %v639_v31 = vpop.f32.mrf.mxu1 }
 0x209   : > { %v706_v33 = vmax.f32 %v645_v30, %v648_v26  ;;  %v640_v34 = vadd.f32 %v1755_v27, %v639_v31 }
 0x20a   : > { %v1222_v35 = vpop.f32.mrf.mxu1 }
 0x20b   : > { %v707_v36 = vrot.slane %v706_v33, 4  ;;  %v699_v37 = vmax.f32 %v637_v32, %v640_v34  ;;  %v1762_v44 = vadd.f32 %v1222_v35, %v1755_v27 }
 0x20c   : > { %v652_v38 = vpop.f32.mrf.mxu1 }
 0x20d   : > { %v708_v39 = vmax.f32 %v706_v33, %v707_v36  ;;  %v700_v40 = vrot.slane %v699_v37, 4  ;;  %v1768_v46 = vadd.f32 %v1755_v27, %v652_v38 }
 0x20e   : > { %v1223_v41 = vpop.f32.mrf.mxu1 }
 0x20f   : > { %v709_v42 = vrot.slane %v708_v39, 2  ;;  %v701_v43 = vmax.f32 %v699_v37, %v700_v40  ;;  %v1765_v45 = vadd.f32 %v1223_v41, %v1755_v27 }
 0x210   : > { %v655_v47 = vpop.f32.mrf.mxu1 }
 0x211   : > { %v710_v48 = vmax.f32 %v708_v39, %v709_v42  ;;  %v702_v49 = vrot.slane %v701_v43, 2  ;;  %v720_v50 = vmax.f32 %v1762_v44, %v1765_v45  ;;  %v1773_v51 = vadd.f32 %v1755_v27, %v655_v47 }
 0x212   : > { %v1226_v52 = vpop.f32.mrf.mxu1 }
 0x213   : > { %v711_v53 = vrot.slane %v710_v48, 1  ;;  %v703_v54 = vmax.f32 %v701_v43, %v702_v49  ;;  %v721_v55 = vrot.slane %v720_v50, 4  ;;  %v713_v56 = vmax.f32 %v1768_v46, %v1773_v51 }
 0x214   : > { %v668_v57 = vpop.f32.mrf.mxu1  ;;  %v1778_v5 = vadd.f32 %v1226_v52, %v1755_v27 }
 0x215   : > { %v712_v58 = vmax.f32 %v710_v48, %v711_v53  ;;  %v704_v59 = vrot.slane %v703_v54, 1  ;;  %v722_v60 = vmax.f32 %v720_v50, %v721_v55  ;;  %v714_v61 = vrot.slane %v713_v56, 4 }
 0x216   : > { %v1227_v62 = vpop.f32.mrf.mxu1  ;;  %v1789_v28 = vadd.f32 %v1755_v27, %v668_v57 }
 0x217   : > { %v757_v63 = vsub.f32 %v645_v30, %v712_v58  ;;  %v758_v0 = vsub.f32 %v648_v26, %v712_v58  ;;  %v705_v1 = vmax.f32 %v703_v54, %v704_v59  ;;  %v723_v2 = vrot.slane %v722_v60, 2 }
 0x218   : > { %v715_v3 = vmax.f32 %v713_v56, %v714_v61  ;;  %v1781_v6 = vadd.f32 %v1227_v62, %v1755_v27  ;;  %v671_v7 = vpop.f32.mrf.mxu1  ;;  %v861_v59 = vunpack.c.l.bf16 %v1722_v14 }
 0x219   : > { %v775_v8 = vmul.f32 1.442695, %v757_v63  ;;  %v777_v9 = vmul.f32 1.442695, %v758_v0  ;;  %v755_v10 = vsub.f32 %v637_v32, %v705_v1  ;;  %v756_v11 = vsub.f32 %v640_v34, %v705_v1 }
 0x21a   : > { %v724_v12 = vmax.f32 %v722_v60, %v723_v2  ;;  %v716_v13 = vrot.slane %v715_v3, 2  ;;  %v734_v21 = vmax.f32 %v1778_v5, %v1781_v6  ;;  %v1786_v22 = vadd.f32 %v1755_v27, %v671_v7  ;;  %v1230_v23 = vpop.f32.mrf.mxu1 }
 0x21b   : > { %1333 = vpow2.f32 %v775_v8  ;;  %v771_v24 = vmul.f32 1.442695, %v755_v10  ;;  %v773_v25 = vmul.f32 1.442695, %v756_v11  ;;  %v1794_v38 = vadd.f32 %v1230_v23, %v1755_v27 }
 0x21c   : > { %1335 = vpow2.f32 %v777_v9  ;;  %v725_v29 = vrot.slane %v724_v12, 1  ;;  %v717_v30 = vmax.f32 %v715_v3, %v716_v13  ;;  %v735_v26 = vrot.slane %v734_v21, 4  ;;  %v684_v31 = vpop.f32.mrf.mxu1 }
 0x21d   : > { %1337 = vpow2.f32 %v771_v24  ;;  %v727_v32 = vmax.f32 %v1789_v28, %v1786_v22  ;;  %v1802_v49 = vadd.f32 %v1755_v27, %v684_v31  ;;  %v859_v0 = vunpack.c.l.bf16 %v1718_v4 }
 0x21e   : > { %1339 = vpow2.f32 %v773_v25  ;;  %v726_v33 = vmax.f32 %v724_v12, %v725_v29  ;;  %v718_v34 = vrot.slane %v717_v30, 1  ;;  %v736_v35 = vmax.f32 %v734_v21, %v735_v26  ;;  %v1231_v36 = vpop.f32.mrf.mxu1 }
 0x21f   : > { %v728_v37 = vrot.slane %v727_v32, 4  ;;  %v1797_v39 = vadd.f32 %v1231_v36, %v1755_v27  ;;  %v860_v8 = vunpack.c.h.bf16 %v1718_v4 }
 0x220   : > { %v761_v40 = vsub.f32 %v1762_v44, %v726_v33  ;;  %v762_v41 = vsub.f32 %v1765_v45, %v726_v33  ;;  %v719_v42 = vmax.f32 %v717_v30, %v718_v34  ;;  %v737_v43 = vrot.slane %v736_v35, 2  ;;  %v687_v47 = vpop.f32.mrf.mxu1 }
 0x221   : > { %v729_v48 = vmax.f32 %v727_v32, %v728_v37  ;;  %v748_v50 = vmax.f32 %v1794_v38, %v1797_v39  ;;  %v1807_v52 = vadd.f32 %v1755_v27, %v687_v47  ;;  %v866_v47 = vunpack.c.h.bf16 %v1730_v16 }
 0x222   : > { %v783_v53 = vmul.f32 1.442695, %v761_v40  ;;  %v785_v54 = vmul.f32 1.442695, %v762_v41  ;;  %v759_v55 = vsub.f32 %v1768_v46, %v719_v42  ;;  %v760_v44 = vsub.f32 %v1773_v51, %v719_v42 }
 0x223   : > { %v738_v45 = vmax.f32 %v736_v35, %v737_v43  ;;  %v730_v56 = vrot.slane %v729_v48, 2  ;;  %v749_v57 = vrot.slane %v748_v50, 4  ;;  %v741_v58 = vmax.f32 %v1802_v49, %v1807_v52 }
 0x224   : > { %1341 = vpow2.f32 %v783_v53  ;;  %v779_v60 = vmul.f32 1.442695, %v759_v55  ;;  %v781_v61 = vmul.f32 1.442695, %v760_v44  ;;  %v862_v46 = vunpack.c.h.bf16 %v1722_v14 }
 0x225   : > { %1343 = vpow2.f32 %v785_v54  ;;  %v739_v27 = vrot.slane %v738_v45, 1  ;;  %v731_v62 = vmax.f32 %v729_v48, %v730_v56  ;;  %v750_v63 = vmax.f32 %v748_v50, %v749_v57 }
 0x226   : > { %1345 = vpow2.f32 %v779_v60  ;;  %v742_v51 = vrot.slane %v741_v58, 4  ;;  %v865_v43 = vunpack.c.l.bf16 %v1730_v16  ;;  %v863_v44 = vunpack.c.l.bf16 %v1725_v15 }
 0x227   : > { %1347 = vpow2.f32 %v781_v61  ;;  %v740_v1 = vmax.f32 %v738_v45, %v739_v27  ;;  %v732_v2 = vrot.slane %v731_v62, 1  ;;  %v751_v3 = vrot.slane %v750_v63, 2 }
 0x228   : > { %v1334_v7 = vpop.eup %1333  ;;  %v743_v9 = vmax.f32 %v741_v58, %v742_v51  ;;  %v867_v45 = vunpack.c.l.bf16 %v1733_v17 }
 0x229   : > { %v1336_v10 = vpop.eup %1335  ;;  %v877_v11 = vmul.f32 %v1334_v7, %v861_v59  ;;  %v765_v12 = vsub.f32 %v1778_v5, %v740_v1  ;;  %v766_v13 = vsub.f32 %v1781_v6, %v740_v1  ;;  %v733_v21 = vmax.f32 %v731_v62, %v732_v2 }
 0x22a   : > { %v1338_v23 = vpop.eup %1337  ;;  %v810_v24 = vadd.f32 %v1336_v10, %v1334_v7  ;;  %v878_v14 = vmul.f32 %v1336_v10, %v862_v46  ;;  %v752_v25 = vmax.f32 %v750_v63, %v751_v3  ;;  %v744_v6 = vrot.slane %v743_v9, 2 }
 0x22b   : > { %v1340_v29 = vpop.eup %1339  ;;  %v875_v30 = vmul.f32 %v1338_v23, %v859_v0  ;;  %v791_v26 = vmul.f32 1.442695, %v765_v12  ;;  %v793_v31 = vmul.f32 1.442695, %v766_v13  ;;  %v763_v32 = vsub.f32 %v1789_v28, %v733_v21 }
 0x22c   : > { %v811_v33 = vrot.slane %v810_v24, 4  ;;  %v898_v4 = vadd.f32 %v878_v14, %v877_v11  ;;  %v803_v34 = vadd.f32 %v1340_v29, %v1338_v23  ;;  %v876_v35 = vmul.f32 %v1340_v29, %v860_v8 }
 0x22d   : > { %1349 = vpow2.f32 %v791_v26  ;;  %v764_v5 = vsub.f32 %v1786_v22, %v733_v21  ;;  %v787_v36 = vmul.f32 1.442695, %v763_v32  ;;  %v753_v42 = vrot.slane %v752_v25, 1 }
 0x22e   : > { %v812_v37 = vadd.f32 %v811_v33, %v810_v24  ;;  %v804_v40 = vrot.slane %v803_v34, 4  ;;  %v891_v41 = vadd.f32 %v876_v35, %v875_v30  ;;  %1351 = vpow2.f32 %v793_v31 }
 0x22f   : > { %v789_v48 = vmul.f32 1.442695, %v764_v5  ;;  %v899_v50 = vrot.slane %v898_v4, 4  ;;  %v864_v22 = vunpack.c.h.bf16 %v1725_v15  ;;  %1353 = vpow2.f32 %v787_v36 }
 0x230   : > { %v813_v28 = vrot.slane %v812_v37, 2  ;;  %v805_v53 = vadd.f32 %v804_v40, %v803_v34  ;;  %v892_v54 = vrot.slane %v891_v41, 4  ;;  %v754_v59 = vmax.f32 %v752_v25, %v753_v42 }
 0x231   : > { %v1342_v55 = vpop.eup %1341  ;;  %v745_v60 = vmax.f32 %v743_v9, %v744_v6  ;;  %1355 = vpow2.f32 %v789_v48  ;;  %v900_v46 = vadd.f32 %v899_v50, %v898_v4  ;;  %v869_v33 = vunpack.c.l.bf16 %v1738_v18 }
 0x232   : > { %v1344_v56 = vpop.eup %1343  ;;  %v814_v57 = vadd.f32 %v813_v28, %v812_v37  ;;  %v806_v58 = vrot.slane %v805_v53, 2  ;;  %v881_v27 = vmul.f32 %v1342_v55, %v865_v43  ;;  %v893_v1 = vadd.f32 %v892_v54, %v891_v41 }
 0x233   : > { %v1346_v16 = vpop.eup %1345  ;;  %v824_v61 = vadd.f32 %v1344_v56, %v1342_v55  ;;  %v882_v62 = vmul.f32 %v1344_v56, %v866_v47  ;;  %v769_v11 = vsub.f32 %v1794_v38, %v754_v59  ;;  %v770_v9 = vsub.f32 %v1797_v39, %v754_v59 }
 0x234   : > { %v1348_v63 = vpop.eup %1347  ;;  %v815_v0 = vrot.slane %v814_v57, 1  ;;  %v807_v51 = vadd.f32 %v806_v58, %v805_v53  ;;  %v879_v7 = vmul.f32 %v1346_v16, %v863_v44  ;;  %v746_v23 = vrot.slane %v745_v60, 1 }
 0x235   : > { %v825_v2 = vrot.slane %v824_v61, 4  ;;  %v912_v15 = vadd.f32 %v882_v62, %v881_v27  ;;  %v817_v3 = vadd.f32 %v1348_v63, %v1346_v16  ;;  %v880_v21 = vmul.f32 %v1348_v63, %v864_v22 }
 0x236   : > { %v816_v8 = vadd.f32 %v815_v0, %v814_v57  ;;  %v808_v10 = vrot.slane %v807_v51, 1  ;;  %v901_v24 = vrot.slane %v900_v46, 2  ;;  %v894_v25 = vrot.slane %v893_v1, 2 }
 0x237   : > { %v826_v12 = vadd.f32 %v825_v2, %v824_v61  ;;  %v818_v13 = vrot.slane %v817_v3, 4  ;;  %v913_v29 = vrot.slane %v912_v15, 4  ;;  %v905_v31 = vadd.f32 %v880_v21, %v879_v7 }
 0x238   : > { %v809_v14 = vadd.f32 %v808_v10, %v807_v51  ;;  %1357 = vrcp.f32 %v816_v8  ;;  %v799_v4 = vmul.f32 1.442695, %v769_v11  ;;  %v801_v38 = vmul.f32 1.442695, %v770_v9 }
 0x239   : > { %v827_v30 = vrot.slane %v826_v12, 2  ;;  %v819_v26 = vadd.f32 %v818_v13, %v817_v3  ;;  %v870_v39 = vunpack.c.h.bf16 %v1738_v18  ;;  %v906_v5 = vrot.slane %v905_v31, 4 }
 0x23a   : > { %v1350_v32 = vpop.eup %1349  ;;  %1359 = vrcp.f32 %v809_v14  ;;  %v868_v6 = vunpack.c.h.bf16 %v1733_v17  ;;  %v902_v37 = vadd.f32 %v901_v24, %v900_v46  ;;  %v747_v40 = vmax.f32 %v745_v60, %v746_v23 }
 0x23b   : > { %v828_v34 = vadd.f32 %v827_v30, %v826_v12  ;;  %v820_v35 = vrot.slane %v819_v26, 2  ;;  %v1352_v36 = vpop.eup %1351  ;;  %1361 = vpow2.f32 %v799_v4  ;;  %v895_v41 = vadd.f32 %v894_v25, %v893_v1 }
 0x23c   : > { %v914_v43 = vadd.f32 %v913_v29, %v912_v15  ;;  %v1354_v48 = vpop.eup %1353  ;;  %v838_v28 = vadd.f32 %v1352_v36, %v1350_v32  ;;  %v885_v50 = vmul.f32 %v1350_v32, %v869_v33  ;;  %1363 = vpow2.f32 %v801_v38 }
 0x23d   : > { %v829_v42 = vrot.slane %v828_v34, 1  ;;  %v821_v47 = vadd.f32 %v820_v35, %v819_v26  ;;  %v767_v53 = vsub.f32 %v1802_v49, %v747_v40  ;;  %v907_v55 = vadd.f32 %v906_v5, %v905_v31 }
 0x23e   : > { %v886_v44 = vmul.f32 %v1352_v36, %v870_v39  ;;  %v1356_v22 = vpop.eup %1355  ;;  %v839_v56 = vrot.slane %v838_v28, 4  ;;  %v883_v57 = vmul.f32 %v1354_v48, %v867_v45  ;;  %v768_v58 = vsub.f32 %v1807_v52, %v747_v40 }
 0x23f   : > { %v830_v18 = vadd.f32 %v829_v42, %v828_v34  ;;  %v822_v54 = vrot.slane %v821_v47, 1  ;;  %v795_v59 = vmul.f32 1.442695, %v767_v53  ;;  %v903_v60 = vrot.slane %v902_v37, 1 }
 0x240   : > { %v831_v61 = vadd.f32 %v1356_v22, %v1354_v48  ;;  %v896_v27 = vrot.slane %v895_v41, 1  ;;  %v840_v62 = vadd.f32 %v839_v56, %v838_v28  ;;  %v884_v63 = vmul.f32 %v1356_v22, %v868_v6 }
 0x241   : > { %1365 = vrcp.f32 %v830_v18  ;;  %v823_v16 = vadd.f32 %v822_v54, %v821_v47  ;;  %v908_v49 = vrot.slane %v907_v55, 2  ;;  %v797_v46 = vmul.f32 1.442695, %v768_v58 }
 0x242   : > { %1367 = vpow2.f32 %v795_v59  ;;  %v832_v0 = vrot.slane %v831_v61, 4  ;;  %v915_v51 = vrot.slane %v914_v43, 2  ;;  %v841_v1 = vrot.slane %v840_v62, 2 }
 0x243   : > { %1369 = vrcp.f32 %v823_v16  ;;  %v926_v2 = vadd.f32 %v886_v44, %v885_v50  ;;  %v919_v17 = vadd.f32 %v884_v63, %v883_v57  ;;  %v897_v15 = vadd.f32 %v896_v27, %v895_v41 }
 0x244   : > { %v833_v45 = vadd.f32 %v832_v0, %v831_v61  ;;  %1371 = vpow2.f32 %v797_v46  ;;  %v842_v3 = vadd.f32 %v841_v1, %v840_v62  ;;  %v904_v8 = vadd.f32 %v903_v60, %v902_v37 }
 0x245   : > { %v1358_v52 = vpop.eup %1357  ;;  %v909_v10 = vadd.f32 %v908_v49, %v907_v55  ;;  %v920_v9 = vrot.slane %v919_v17, 4  ;;  %v916_v12 = vadd.f32 %v915_v51, %v914_v43  ;;  %v927_v21 = vrot.slane %v926_v2, 4 }
 0x246   : > { %v834_v11 = vrot.slane %v833_v45, 2  ;;  %v843_v13 = vrot.slane %v842_v3, 1  ;;  %v956_v25 = vmul.f32 %v1358_v52, %v904_v8  ;;  %v871_v34 = vunpack.c.l.bf16 %v1741_v19 }
 0x247   : > { %v1360_v7 = vpop.eup %1359  ;;  %v910_v26 = vrot.slane %v909_v10, 1  ;;  %v921_v32 = vadd.f32 %v920_v9, %v919_v17  ;;  %v928_v4 = vadd.f32 %v927_v21, %v926_v2  ;;  %v917_v39 = vrot.slane %v916_v12, 1 }
 0x248   : > { %v955_v23 = vmul.f32 %v1360_v7, %v897_v15  ;;  %v1362_v24 = vpop.eup %1361  ;;  %v835_v14 = vadd.f32 %v834_v11, %v833_v45  ;;  %v844_v29 = vadd.f32 %v843_v13, %v842_v3  ;;  %v873_v36 = vunpack.c.l.bf16 %v1746_v20 }
 0x249   : > { %v1364_v30 = vpop.eup %1363  ;;  %v874_v6 = vunpack.c.h.bf16 %v1746_v20  ;;  %v872_v41 = vunpack.c.h.bf16 %v1741_v19  ;;  %v911_v42 = vadd.f32 %v910_v26, %v909_v10  ;;  %v922_v43 = vrot.slane %v921_v32, 2 }
 0x24a   : > { %v836_v31 = vrot.slane %v835_v14, 1  ;;  %v972_v33 = vsel %vm971_vm0, %v956_v25, %v955_v23  ;;  %v852_v38 = vadd.f32 %v1364_v30, %v1362_v24  ;;  %1373 = vrcp.f32 %v844_v29 }
 0x24b   : > { %v918_v28 = vadd.f32 %v917_v39, %v916_v12  ;;  %v929_v50 = vrot.slane %v928_v4, 2  ;;  %v889_v44 = vmul.f32 %v1362_v24, %v873_v36  ;;  %v890_v20 = vmul.f32 %v1364_v30, %v874_v6 }
 0x24c   : > { %v837_v35 = vadd.f32 %v836_v31, %v835_v14  ;;  %v853_v37 = vrot.slane %v852_v38, 4  ;;  %v923_v58 = vadd.f32 %v922_v43, %v921_v32 }
 0x24d   : > { %v930_v60 = vadd.f32 %v929_v50, %v928_v4  ;;  %v940_v62 = vadd.f32 %v890_v20, %v889_v44 }
 0x24e   : > { %v1366_v5 = vpop.eup %1365  ;;  %1375 = vrcp.f32 %v837_v35  ;;  %v854_v48 = vadd.f32 %v853_v37, %v852_v38  ;;  %v924_v49 = vrot.slane %v923_v58, 1 }
 0x24f   : > { %v1368_v40 = vpop.eup %1367  ;;  %v958_v22 = vmul.f32 %v1366_v5, %v918_v28  ;;  %v931_v46 = vrot.slane %v930_v60, 1  ;;  %v941_v2 = vrot.slane %v940_v62, 4 }
 0x250   : > { %v1370_v47 = vpop.eup %1369  ;;  %v887_v53 = vmul.f32 %v1368_v40, %v871_v34  ;;  %v855_v55 = vrot.slane %v854_v48, 2  ;;  %v925_v52 = vadd.f32 %v924_v49, %v923_v58 }
 0x251   : > { %v957_v18 = vmul.f32 %v1370_v47, %v911_v42  ;;  %v1372_v54 = vpop.eup %1371  ;;  %v932_v7 = vadd.f32 %v931_v46, %v930_v60  ;;  %v942_v9 = vadd.f32 %v941_v2, %v940_v62 }
 0x252   : > { %v845_v56 = vadd.f32 %v1372_v54, %v1368_v40  ;;  %v888_v57 = vmul.f32 %v1372_v54, %v872_v41  ;;  %v856_v59 = vadd.f32 %v855_v55, %v854_v48 }
 0x253   : > { %v974_v19 = vsel %vm973_vm1, %v957_v18, %v972_v33  ;;  %v943_v14 = vrot.slane %v942_v9, 2 }
 0x254   : > { %v976_v16 = vsel %vm975_vm2, %v958_v22, %v974_v19  ;;  %v846_v61 = vrot.slane %v845_v56, 4  ;;  %v933_v27 = vadd.f32 %v888_v57, %v887_v53  ;;  %v857_v0 = vrot.slane %v856_v59, 1 }
 0x255   : > { %v944_v29 = vadd.f32 %v943_v14, %v942_v9 }
 0x256   : > { %v847_v63 = vadd.f32 %v846_v61, %v845_v56  ;;  %v934_v1 = vrot.slane %v933_v27, 4  ;;  %v858_v3 = vadd.f32 %v857_v0, %v856_v59 }
 0x257   : > { %v1374_v17 = vpop.eup %1373  ;;  %v945_v26 = vrot.slane %v944_v29, 1 }
 0x258   : > { %v848_v51 = vrot.slane %v847_v63, 2  ;;  %v935_v10 = vadd.f32 %v934_v1, %v933_v27  ;;  %v960_v12 = vmul.f32 %v1374_v17, %v932_v7  ;;  %1377 = vrcp.f32 %v858_v3 }
 0x259   : > { %v946_v4 = vadd.f32 %v945_v26, %v944_v29 }
 0x25a   : > { %v849_v45 = vadd.f32 %v848_v51, %v847_v63  ;;  %v936_v24 = vrot.slane %v935_v10, 2 }
 0x25b   : > { %v1376_v15 = vpop.eup %1375 }
 0x25c   : > { %v850_v8 = vrot.slane %v849_v45, 1  ;;  %v959_v11 = vmul.f32 %v1376_v15, %v925_v52  ;;  %v937_v25 = vadd.f32 %v936_v24, %v935_v10 }
 0x25e   : > { %v851_v13 = vadd.f32 %v850_v8, %v849_v45  ;;  %v978_v21 = vsel %vm977_vm3, %v959_v11, %v976_v16  ;;  %v938_v30 = vrot.slane %v937_v25, 1 }
 0x25f   : > { %v980_v23 = vsel %vm979_vm4, %v960_v12, %v978_v21 }
 0x260   : > { %1379 = vrcp.f32 %v851_v13  ;;  %v939_v32 = vadd.f32 %v938_v30, %v937_v25 }
 0x265   : > { %v1378_v31 = vpop.eup %1377 }
 0x266   : > { %v962_v39 = vmul.f32 %v1378_v31, %v946_v4 }
 0x26d   : > { %v1380_v33 = vpop.eup %1379 }
 0x26e   : > { %v961_v38 = vmul.f32 %v1380_v33, %v939_v32 }
 0x270   : > { %v982_v34 = vsel %vm981_vm5, %v961_v38, %v980_v23 }
 0x271   : > { %v984_v35 = vsel %vm983_vm6, %v962_v39, %v982_v34 }
 0x272   : > { %986 = vst [vmem:[%s272_s14] sm:$0xff] %v984_v35 }
 0x273   : > { %1474 = shalt.err (!%p1471_p3)
}
 0x274   : > { %s1475_s24 = scalar_lea.hbm %s1845_s17, 128  ;;  %s1479_s9 = scalar_lea.hbm %s1887_s5, 256 }
 0x275   : > { %p1476_p11 = scmp.ne.s32.totalorder %s1845_s17, %s1475_s24  ;;  %p1480_p4 = scmp.lt.s32.totalorder %s1845_s17, %s1887_s5 }
 0x276   : > { %p1481_p6 = scmp.lt.s32.totalorder %s1479_s9, %s1475_s24 }
 0x277   : > { %p1477_p9 = pnand %p1476_p11, %p1904_p2 }
 0x278   : > { %p1482_p8 = por %p1481_p6, %p1480_p4 }
 0x279   : > { %p1478_p1 = pneg %p1477_p9 }
 0x27b   : > { %p1483_p5 = pnand %p1482_p8, %p1478_p1 }
 0x27d   : > { %1486 = shalt.err (!%p1483_p5)
}
 0x27e   : > { %1242 = dma.vmem_to_hbm [thread:$0]  (%p1904_p2), %s1002_s7, 128, %s1845_s17, %s988_s16  }
 0x27f PF: > { %s1013_s13 = sand.u32 1, %s1517_s18   ;;  %p1905_p7 = scmp.ne.s32.totalorder %s1894_s25, 0 }
 0x280   : > { %p1906_p12 = scmp.ge.s32.totalorder %s1529_s21, 2  ;;  %s1014_s14 = scalar_lea.sflag [#allocation4], %s1013_s13 }
 0x282   : > { %p1256_p13 = pnand %p1906_p12, %p1905_p7 }
 0x284   : > { %p1257_p0 = pneg %p1256_p13 }
 0x286   : > { %1512 = dma.done.wait (%p1257_p0), %s1014_s14, 128  }
 0x287   : > { %1514 = vsyncadd (%p1257_p0), %s1014_s14, 4294967168  ;;  %p19_p10 = scmp.ge.s32.totalorder %s1645_s15, 4   ;;  %s1907_s18 = smov %s1521_s19 }
 0x288   : > { %s1908_s19 = smov %s1525_s20  ;;  %s1909_s20 = smov %s1661_s27 }
 0x289   : > { %s1910_s21 = smov %s1645_s15  ;;  %21 = sbr.rel (!%p19_p10) target bundleno = 6 (0x6), region = 93 }
 0x28e   :  { %1019 = vsyncpa [#allocation3], 1 }
 0x28f   :  { %1021 = vsyncpa [#allocation3 + $0x1], 1 }
 0x290   :  { %1022 = vsyncpa [#allocation6], 1 }
 0x291   :  { %1023 = vsyncpa [#allocation4], 1 }
 0x292   :  { %1025 = vsyncpa [#allocation4 + $0x1], 1 }

</bundles_post_ra>
